<compile_context>
chip_gen: v7x
topology: tpu7x:2x2x1
jax: 0.10.0
libtpu: 0.0.40
codegen_flags: <defaults>
</compile_context>

<pallas_src>
import functools

import jax
import jax.numpy as jnp
from jax.experimental import pallas as pl
from jax.experimental.pallas import tpu as pltpu

_ROLL_MIN_C = 32  # switch the pairwise loop from sublane slices to XLU rolls


def _margin_ranking_kernel(cand_ref, summ_ref, out_ref, *, margin, batch, num_cand):
    """Per-batch-element partial loss, batch on lanes.

    cand_ref: (C, TL) candidate scores (native dtype), batch axis on lanes
    summ_ref: (1, TL) gold-summary scores (native dtype)
    out_ref : (1, TL) f32 per-batch-element contribution; sum(out) == total loss
    """
    s = cand_ref[...].astype(jnp.float32)   # in-kernel upcast keeps HBM stream narrow
    t = summ_ref[...].astype(jnp.float32)   # (1, TL)
    C = num_cand

    lane_acc = jnp.zeros((1, s.shape[1]), jnp.float32)

    # term 0: MarginRankingLoss(x, x, 1, margin=0) == 0 identically -> skipped.

    # pairwise candidate-ranking terms, i = 1..C-1 (C is small & static ->
    # unrolled).  The mean over B*(C-i) elements is folded into the scale.
    if C >= _ROLL_MIN_C:
        # large C: rotate along the sublane axis on the XLU (idle here) instead
        # of materialising O(C) shifted slice copies on the VPU.
        row_id = jax.lax.broadcasted_iota(jnp.int32, (C, 1), 0)   # hoisted
        for i in range(1, C):
            rolled = pltpu.roll(s, shift=C - i, axis=0)   # rolled[j] == s[(j+i) % C]
            term = jnp.maximum(rolled - s + jnp.float32(margin * i), 0.0)
            term = jnp.where(row_id < (C - i), term, 0.0)
            lane_acc += jnp.sum(term, axis=0, keepdims=True) * jnp.float32(
                1.0 / (batch * (C - i)))
    else:
        for i in range(1, C):
            pos = s[: C - i, :]
            neg = s[i:, :]
            term = jnp.maximum(neg - pos + jnp.float32(margin * i), 0.0)
            lane_acc += jnp.sum(term, axis=0, keepdims=True) * jnp.float32(
                1.0 / (batch * (C - i)))

    # gold-summary term: relu(candidate - summary), mean over B*C.
    gold = jnp.maximum(s - t, 0.0)
    lane_acc += jnp.sum(gold, axis=0, keepdims=True) * jnp.float32(1.0 / (batch * C))

    # Lane-dense, unmasked store.  Padded lanes of a ragged final block hold
    # unspecified data, but every op above is lane-local and Pallas clips the
    # padded region at writeback, so no masking is required.
    out_ref[...] = lane_acc


@functools.lru_cache(maxsize=None)
def _block_byte_target():
    """Per-generation candidate-block byte budget (Pallas double-buffers it)."""
    # v7x: ~3.2 TB/s HBM but only 64 MiB VMEM/TC -> >=4 MiB blocks to amortise
    #      the ~0.35 us/grid-step overhead.
    # v6e: measured tile sweep plateaus ~85% of HBM roofline at ~2 MiB tiles.
    # v5e: 16 MiB default scoped VMEM & slowest HBM -> 2 MiB (x2 buffers) is safe.
    try:
        if pltpu.get_tpu_info().vmem_capacity_bytes <= 64 * 1024 * 1024:
            return 4 * 1024 * 1024            # v7x-class part
        return 2 * 1024 * 1024
    except Exception:
        pass
    try:
        if "v7" in jax.devices()[0].device_kind.lower():
            return 4 * 1024 * 1024
    except Exception:
        pass
    return 2 * 1024 * 1024


def _pick_block_cols(B, C, itemsize, block_cols=None):
    """Lane-block width: a multiple of 128 (or the full batch), sized by bytes."""
    if block_cols is not None:
        if block_cols >= B:
            return B
        return max(128, (int(block_cols) // 128) * 128)
    tl = _block_byte_target() // max(1, C * itemsize)
    if tl >= B:
        # Whole batch fits in one block.  If there is enough work, still split
        # into two lane blocks so the "parallel" grid axis can shard across
        # v7x's two TensorCores (one extra ~0.35 us step is noise on 1-TC parts).
        if B >= 2 * 128:
            half = -(-B // 2)
            return ((half + 127) // 128) * 128
        return B
    return max(128, (int(tl) // 128) * 128)


def margin_ranking_loss(candidate_score, summary_score, margin, *, block_cols=None):
    """JAX/Pallas port of MatchSum MarginRankingLoss.forward.

    candidate_score: (B, C); summary_score: (B,) or (B, 1)  ->  scalar f32 loss.
    """
    B, C = candidate_score.shape
    # Lane-dense layout: batch on lanes.  The transpose is one cheap XLA pass
    # over a small array and buys full-lane DMA / VPU / store utilisation.
    cand_t = jnp.transpose(candidate_score)          # (C, B)
    summ_t = jnp.reshape(summary_score, (1, B))      # (1, B)

    tl = _pick_block_cols(B, C, jnp.dtype(candidate_score.dtype).itemsize, block_cols)
    grid = (pl.cdiv(B, tl),)

    kernel = functools.partial(
        _margin_ranking_kernel, margin=float(margin), batch=B, num_cand=C)

    per_lane = pl.pallas_call(
        kernel,
        out_shape=jax.ShapeDtypeStruct((1, B), jnp.float32),
        grid_spec=pltpu.PrefetchScalarGridSpec(
            num_scalar_prefetch=0,
            grid=grid,
            in_specs=[
                pl.BlockSpec((C, tl), lambda i: (0, i)),   # candidate scores
                pl.BlockSpec((1, tl), lambda i: (0, i)),   # summary scores
            ],
            out_specs=pl.BlockSpec((1, tl), lambda i: (0, i)),
        ),
        compiler_params=pltpu.CompilerParams(
            dimension_semantics=("parallel",)),   # lane blocks -> both TCs on v7x
    )(cand_t, summ_t)

    # Output is tiny ((1, B) f32); the final combine is one fused XLA reduce.
    return jnp.sum(per_lane)


class MarginRankingLoss:
    """JAX/Pallas port of the MatchSum MarginRankingLoss module."""

    def __init__(self, margin):
        self.margin = float(margin)

    def __call__(self, candidate_score, summary_score):
        # TODO(synk): the torch module's .cuda(device) placement calls are
        # host-side device plumbing with no Pallas equivalent; omitted.
        return margin_ranking_loss(candidate_score, summary_score, self.margin)

    forward = __call__


def _ref_loss(cand, summ, margin):
    """Pure-JAX reference implementing the exact torch forward."""
    cand = cand.astype(jnp.float32)
    summ = summ.astype(jnp.float32)
    _, C = cand.shape
    total = jnp.float32(0.0)                      # MRL(x, x, 1, margin=0) == 0
    for i in range(1, C):
        pos = cand[:, : C - i]
        neg = cand[:, i:]
        total = total + jnp.mean(jnp.maximum(neg - pos + margin * i, 0.0))
    total = total + jnp.mean(jnp.maximum(cand - summ[:, None], 0.0))
    return total


if __name__ == "__main__":
    key = jax.random.PRNGKey(0)
    k1, k2, k3, k4, k5, k6 = jax.random.split(key, 6)
    margin = 0.01

    # typical MatchSum shapes: batch=4, num_candidates=8 -> single-block path
    B, C = 4, 8
    cand = jax.random.normal(k1, (B, C), dtype=jnp.float32)
    summ = jax.random.normal(k2, (B,), dtype=jnp.float32)
    loss_mod = MarginRankingLoss(margin)
    loss = jax.block_until_ready(loss_mod(cand, summ))
    ref = _ref_loss(cand, summ, margin)
    assert jnp.allclose(loss, ref, rtol=1e-5, atol=1e-5), (float(loss), float(ref))

    # tiled multi-block path with a ragged (padded) final lane block
    B2, C2 = 300, 6
    cand2 = jax.random.normal(k3, (B2, C2), dtype=jnp.float32)
    summ2 = jax.random.normal(k4, (B2,), dtype=jnp.float32)
    loss2 = jax.block_until_ready(
        margin_ranking_loss(cand2, summ2, margin, block_cols=128))
    ref2 = _ref_loss(cand2, summ2, margin)
    assert jnp.allclose(loss2, ref2, rtol=1e-4, atol=1e-5), (float(loss2), float(ref2))

    # large-C path (pairwise terms via pltpu.roll on the sublane axis)
    B3, C3 = 256, 40
    cand3 = jax.random.normal(k5, (B3, C3), dtype=jnp.float32)
    summ3 = jax.random.normal(k6, (B3,), dtype=jnp.float32)
    loss3 = jax.block_until_ready(
        margin_ranking_loss(cand3, summ3, margin, block_cols=128))
    ref3 = _ref_loss(cand3, summ3, margin)
    assert jnp.allclose(loss3, ref3, rtol=1e-4, atol=1e-4), (float(loss3), float(ref3))

    print("KERNEL_OK")
</pallas_src>

<mosaic_0001>
module attributes {stable_mosaic.version = 11 : i64} {
  func.func @_margin_ranking_kernel(%arg0: i32, %arg1: memref<8x4xf32, #tpu.memory_space<vmem>>, %arg2: memref<1x4xf32, #tpu.memory_space<vmem>>, %arg3: memref<1x4xf32, #tpu.memory_space<vmem>>) attributes {dimension_semantics = [#tpu.dimension_semantics<parallel>], iteration_bounds = array<i64: 1>, scalar_prefetch = 0 : i64, scratch_operands = 0 : i64, tpu.core_type = #tpu.core_type<tc>, window_params = [{transform_indices = @transform_0, window_bounds = array<i64: 8, 4>}, {transform_indices = @transform_1, window_bounds = array<i64: 1, 4>}, {transform_indices = @transform_2, window_bounds = array<i64: 1, 4>}]} {
    %c0 = arith.constant 0 : index
    %c0_0 = arith.constant 0 : index
    %0 = vector.load %arg1[%c0, %c0_0] : memref<8x4xf32, #tpu.memory_space<vmem>>, vector<8x4xf32>
    %c0_1 = arith.constant 0 : index
    %c0_2 = arith.constant 0 : index
    %1 = vector.load %arg2[%c0_1, %c0_2] : memref<1x4xf32, #tpu.memory_space<vmem>>, vector<1x4xf32>
    %cst = arith.constant 0.000000e+00 : f32
    %2 = vector.broadcast %cst : f32 to vector<1x4xf32>
    %3 = vector.extract_strided_slice %0 {offsets = [0, 0], sizes = [7, 4], strides = [1, 1]} : vector<8x4xf32> to vector<7x4xf32>
    %4 = vector.extract_strided_slice %0 {offsets = [1, 0], sizes = [7, 4], strides = [1, 1]} : vector<8x4xf32> to vector<7x4xf32>
    %5 = arith.subf %4, %3 : vector<7x4xf32>
    %cst_3 = arith.constant 0.00999999977 : f32
    %6 = vector.broadcast %cst_3 : f32 to vector<7x4xf32>
    %7 = arith.addf %5, %6 : vector<7x4xf32>
    %cst_4 = arith.constant 0.000000e+00 : f32
    %8 = vector.broadcast %cst_4 : f32 to vector<7x4xf32>
    %9 = arith.maximumf %7, %8 : vector<7x4xf32>
    %cst_5 = arith.constant dense<0.000000e+00> : vector<4xf32>
    %10 = vector.multi_reduction <add>, %9, %cst_5 [0] : vector<7x4xf32> to vector<4xf32>
    %11 = vector.shape_cast %10 : vector<4xf32> to vector<1x4xf32>
    %cst_6 = arith.constant 0.0357142873 : f32
    %12 = vector.broadcast %cst_6 : f32 to vector<1x4xf32>
    %13 = arith.mulf %11, %12 : vector<1x4xf32>
    %14 = arith.addf %2, %13 : vector<1x4xf32>
    %15 = vector.extract_strided_slice %0 {offsets = [0, 0], sizes = [6, 4], strides = [1, 1]} : vector<8x4xf32> to vector<6x4xf32>
    %16 = vector.extract_strided_slice %0 {offsets = [2, 0], sizes = [6, 4], strides = [1, 1]} : vector<8x4xf32> to vector<6x4xf32>
    %17 = arith.subf %16, %15 : vector<6x4xf32>
    %cst_7 = arith.constant 2.000000e-02 : f32
    %18 = vector.broadcast %cst_7 : f32 to vector<6x4xf32>
    %19 = arith.addf %17, %18 : vector<6x4xf32>
    %cst_8 = arith.constant 0.000000e+00 : f32
    %20 = vector.broadcast %cst_8 : f32 to vector<6x4xf32>
    %21 = arith.maximumf %19, %20 : vector<6x4xf32>
    %cst_9 = arith.constant dense<0.000000e+00> : vector<4xf32>
    %22 = vector.multi_reduction <add>, %21, %cst_9 [0] : vector<6x4xf32> to vector<4xf32>
    %23 = vector.shape_cast %22 : vector<4xf32> to vector<1x4xf32>
    %cst_10 = arith.constant 0.0416666679 : f32
    %24 = vector.broadcast %cst_10 : f32 to vector<1x4xf32>
    %25 = arith.mulf %23, %24 : vector<1x4xf32>
    %26 = arith.addf %14, %25 : vector<1x4xf32>
    %27 = vector.extract_strided_slice %0 {offsets = [0, 0], sizes = [5, 4], strides = [1, 1]} : vector<8x4xf32> to vector<5x4xf32>
    %28 = vector.extract_strided_slice %0 {offsets = [3, 0], sizes = [5, 4], strides = [1, 1]} : vector<8x4xf32> to vector<5x4xf32>
    %29 = arith.subf %28, %27 : vector<5x4xf32>
    %cst_11 = arith.constant 3.000000e-02 : f32
    %30 = vector.broadcast %cst_11 : f32 to vector<5x4xf32>
    %31 = arith.addf %29, %30 : vector<5x4xf32>
    %cst_12 = arith.constant 0.000000e+00 : f32
    %32 = vector.broadcast %cst_12 : f32 to vector<5x4xf32>
    %33 = arith.maximumf %31, %32 : vector<5x4xf32>
    %cst_13 = arith.constant dense<0.000000e+00> : vector<4xf32>
    %34 = vector.multi_reduction <add>, %33, %cst_13 [0] : vector<5x4xf32> to vector<4xf32>
    %35 = vector.shape_cast %34 : vector<4xf32> to vector<1x4xf32>
    %cst_14 = arith.constant 5.000000e-02 : f32
    %36 = vector.broadcast %cst_14 : f32 to vector<1x4xf32>
    %37 = arith.mulf %35, %36 : vector<1x4xf32>
    %38 = arith.addf %26, %37 : vector<1x4xf32>
    %39 = vector.extract_strided_slice %0 {offsets = [0, 0], sizes = [4, 4], strides = [1, 1]} : vector<8x4xf32> to vector<4x4xf32>
    %40 = vector.extract_strided_slice %0 {offsets = [4, 0], sizes = [4, 4], strides = [1, 1]} : vector<8x4xf32> to vector<4x4xf32>
    %41 = arith.subf %40, %39 : vector<4x4xf32>
    %cst_15 = arith.constant 4.000000e-02 : f32
    %42 = vector.broadcast %cst_15 : f32 to vector<4x4xf32>
    %43 = arith.addf %41, %42 : vector<4x4xf32>
    %cst_16 = arith.constant 0.000000e+00 : f32
    %44 = vector.broadcast %cst_16 : f32 to vector<4x4xf32>
    %45 = arith.maximumf %43, %44 : vector<4x4xf32>
    %cst_17 = arith.constant dense<0.000000e+00> : vector<4xf32>
    %46 = vector.multi_reduction <add>, %45, %cst_17 [0] : vector<4x4xf32> to vector<4xf32>
    %47 = vector.shape_cast %46 : vector<4xf32> to vector<1x4xf32>
    %cst_18 = arith.constant 6.250000e-02 : f32
    %48 = vector.broadcast %cst_18 : f32 to vector<1x4xf32>
    %49 = arith.mulf %47, %48 : vector<1x4xf32>
    %50 = arith.addf %38, %49 : vector<1x4xf32>
    %51 = vector.extract_strided_slice %0 {offsets = [0, 0], sizes = [3, 4], strides = [1, 1]} : vector<8x4xf32> to vector<3x4xf32>
    %52 = vector.extract_strided_slice %0 {offsets = [5, 0], sizes = [3, 4], strides = [1, 1]} : vector<8x4xf32> to vector<3x4xf32>
    %53 = arith.subf %52, %51 : vector<3x4xf32>
    %cst_19 = arith.constant 5.000000e-02 : f32
    %54 = vector.broadcast %cst_19 : f32 to vector<3x4xf32>
    %55 = arith.addf %53, %54 : vector<3x4xf32>
    %cst_20 = arith.constant 0.000000e+00 : f32
    %56 = vector.broadcast %cst_20 : f32 to vector<3x4xf32>
    %57 = arith.maximumf %55, %56 : vector<3x4xf32>
    %cst_21 = arith.constant dense<0.000000e+00> : vector<4xf32>
    %58 = vector.multi_reduction <add>, %57, %cst_21 [0] : vector<3x4xf32> to vector<4xf32>
    %59 = vector.shape_cast %58 : vector<4xf32> to vector<1x4xf32>
    %cst_22 = arith.constant 0.0833333358 : f32
    %60 = vector.broadcast %cst_22 : f32 to vector<1x4xf32>
    %61 = arith.mulf %59, %60 : vector<1x4xf32>
    %62 = arith.addf %50, %61 : vector<1x4xf32>
    %63 = vector.extract_strided_slice %0 {offsets = [0, 0], sizes = [2, 4], strides = [1, 1]} : vector<8x4xf32> to vector<2x4xf32>
    %64 = vector.extract_strided_slice %0 {offsets = [6, 0], sizes = [2, 4], strides = [1, 1]} : vector<8x4xf32> to vector<2x4xf32>
    %65 = arith.subf %64, %63 : vector<2x4xf32>
    %cst_23 = arith.constant 6.000000e-02 : f32
    %66 = vector.broadcast %cst_23 : f32 to vector<2x4xf32>
    %67 = arith.addf %65, %66 : vector<2x4xf32>
    %cst_24 = arith.constant 0.000000e+00 : f32
    %68 = vector.broadcast %cst_24 : f32 to vector<2x4xf32>
    %69 = arith.maximumf %67, %68 : vector<2x4xf32>
    %cst_25 = arith.constant dense<0.000000e+00> : vector<4xf32>
    %70 = vector.multi_reduction <add>, %69, %cst_25 [0] : vector<2x4xf32> to vector<4xf32>
    %71 = vector.shape_cast %70 : vector<4xf32> to vector<1x4xf32>
    %cst_26 = arith.constant 1.250000e-01 : f32
    %72 = vector.broadcast %cst_26 : f32 to vector<1x4xf32>
    %73 = arith.mulf %71, %72 : vector<1x4xf32>
    %74 = arith.addf %62, %73 : vector<1x4xf32>
    %75 = vector.extract_strided_slice %0 {offsets = [0, 0], sizes = [1, 4], strides = [1, 1]} : vector<8x4xf32> to vector<1x4xf32>
    %76 = vector.extract_strided_slice %0 {offsets = [7, 0], sizes = [1, 4], strides = [1, 1]} : vector<8x4xf32> to vector<1x4xf32>
    %77 = arith.subf %76, %75 : vector<1x4xf32>
    %cst_27 = arith.constant 7.000000e-02 : f32
    %78 = vector.broadcast %cst_27 : f32 to vector<1x4xf32>
    %79 = arith.addf %77, %78 : vector<1x4xf32>
    %cst_28 = arith.constant 0.000000e+00 : f32
    %80 = vector.broadcast %cst_28 : f32 to vector<1x4xf32>
    %81 = arith.maximumf %79, %80 : vector<1x4xf32>
    %cst_29 = arith.constant dense<0.000000e+00> : vector<4xf32>
    %82 = vector.multi_reduction <add>, %81, %cst_29 [0] : vector<1x4xf32> to vector<4xf32>
    %83 = vector.shape_cast %82 : vector<4xf32> to vector<1x4xf32>
    %cst_30 = arith.constant 2.500000e-01 : f32
    %84 = vector.broadcast %cst_30 : f32 to vector<1x4xf32>
    %85 = arith.mulf %83, %84 : vector<1x4xf32>
    %86 = arith.addf %74, %85 : vector<1x4xf32>
    %87 = vector.broadcast %1 : vector<1x4xf32> to vector<8x4xf32>
    %88 = arith.subf %0, %87 : vector<8x4xf32>
    %cst_31 = arith.constant 0.000000e+00 : f32
    %89 = vector.broadcast %cst_31 : f32 to vector<8x4xf32>
    %90 = arith.maximumf %88, %89 : vector<8x4xf32>
    %cst_32 = arith.constant dense<0.000000e+00> : vector<4xf32>
    %91 = vector.multi_reduction <add>, %90, %cst_32 [0] : vector<8x4xf32> to vector<4xf32>
    %92 = vector.shape_cast %91 : vector<4xf32> to vector<1x4xf32>
    %cst_33 = arith.constant 3.125000e-02 : f32
    %93 = vector.broadcast %cst_33 : f32 to vector<1x4xf32>
    %94 = arith.mulf %92, %93 : vector<1x4xf32>
    %95 = arith.addf %86, %94 : vector<1x4xf32>
    %c0_34 = arith.constant 0 : index
    %c0_35 = arith.constant 0 : index
    %96 = vector.load %arg3[%c0_34, %c0_35] : memref<1x4xf32, #tpu.memory_space<vmem>>, vector<1x4xf32>
    tpu.vector_store %arg3[%c0_34, %c0_35], %95 {strides = array<i32>} : memref<1x4xf32, #tpu.memory_space<vmem>>, vector<1x4xf32>,
    return
  }
  func.func @transform_0(%arg0: i32) -> (i32, i32) {
    %c0_i32 = arith.constant 0 : i32
    %c0_i32_0 = arith.constant 0 : i32
    return %c0_i32, %arg0 : i32, i32
  }
  func.func @transform_1(%arg0: i32) -> (i32, i32) {
    %c0_i32 = arith.constant 0 : i32
    %c0_i32_0 = arith.constant 0 : i32
    return %c0_i32, %arg0 : i32, i32
  }
  func.func @transform_2(%arg0: i32) -> (i32, i32) {
    %c0_i32 = arith.constant 0 : i32
    %c0_i32_0 = arith.constant 0 : i32
    return %c0_i32, %arg0 : i32, i32
  }
}

</mosaic_0001>

<bundles_post_ra>
// kernel: tpu_custom_call.1
= control target key start
LH: loop header
LB: loop body
LE: loop exit
PB: predicated region body
PF: predicated region fallthrough
CT: control target
= control target key end

     0   :  { %s247_s0 = inlined_call_operand.vmem [shape: f32[8,4], index: 0, kind: input, shape index: {}]   ;;  %s248_s1 = inlined_call_operand.vmem [shape: f32[1,4], index: 1, kind: input, shape index: {}]   ;;  %s249_s2 = inlined_call_operand.hbm [shape: f32[1,4], index: 2, kind: output, shape index: {}]  }
   0x1   :  { %v210_v0 = vld [vmem:[%s247_s0] sm:$0xff] }
   0x2   :  { %v15_v1 = vrot.slane %v210_v0, 7  ;;  %v33_v2 = vrot.slane %v210_v0, 6  ;;  %v51_v3 = vrot.slane %v210_v0, 5  ;;  %v69_v4 = vrot.slane %v210_v0, 4 }
   0x3   :  { %7 = vsyncpa [#allocation3], 0  ;;  %v165_v5 = vld [vmem:[%s248_s1] ss:$0 sm:$0xff]  ;;  %vm23_vm0 = vcmask 30720   ;;  %vm41_vm1 = vcmask 29696  }
   0x4   :  { %v87_v6 = vrot.slane %v210_v0, 3  ;;  %v105_v7 = vrot.slane %v210_v0, 2  ;;  %v17_v8 = vsub.f32 %v210_v0, %v15_v1  ;;  %v35_v9 = vsub.f32 %v210_v0, %v33_v2  ;;  %s191_s0 = smov [#allocation2]  }
   0x5   :  { %v53_v10 = vsub.f32 %v210_v0, %v51_v3  ;;  %v71_v11 = vsub.f32 %v210_v0, %v69_v4  ;;  %vm59_vm2 = vcmask 28672   ;;  %vm77_vm3 = vcmask 27648   ;;  %s157_s1 = sshll.u32 %s191_s0, 4  ;;  %s158_s1 = int_to_ptr.vmem [resolvable:$true] %s157_s1 }
   0x6   :  { %v89_v12 = vsub.f32 %v210_v0, %v87_v6  ;;  %v107_v13 = vsub.f32 %v210_v0, %v105_v7  ;;  %v18_v14 = vadd.f32 0.01, %v17_v8  ;;  %v36_v15 = vadd.f32 0.02, %v35_v9  ;;  %s167_s13 = scalar_lea.vmem %s158_s1, 16  ;;  %s171_s14 = scalar_lea.vmem %s158_s1, 32 }
   0x7   :  { %v54_v16 = vadd.f32 0.03, %v53_v10  ;;  %v137_v17 = vsub.f32 %v210_v0, %v165_v5  ;;  %v72_v18 = vadd.f32 0.04, %v71_v11  ;;  %vm95_vm4 = vcmask 26624   ;;  %p168_p0 = scmp.ne.s32.totalorder %s158_s1, %s167_s13  ;;  %p172_p1 = scmp.lt.s32.totalorder %s158_s1, %s158_s1 }
   0x8   :  { %v90_v19 = vadd.f32 0.05, %v89_v12  ;;  %v108_v20 = vadd.f32 0.06, %v107_v13  ;;  %v19_v21 = vmax.f32 %v18_v14, 0.0  ;;  %v37_v22 = vmax.f32 %v36_v15, 0.0  ;;  %p173_p2 = scmp.lt.s32.totalorder %s171_s14, %s167_s13 }
   0x9   :  { %v55_v23 = vmax.f32 %v54_v16, 0.0  ;;  %v138_v24 = vmax.f32 %v137_v17, 0.0  ;;  %v73_v25 = vmax.f32 %v72_v18, 0.0  ;;  %vm139_vm5 = vcmask 31744  }
   0xa   :  { %v91_v26 = vmax.f32 %v90_v19, 0.0  ;;  %v109_v27 = vmax.f32 %v108_v20, 0.0  ;;  %v21_v28 = vrot.slane %v19_v21, 1  ;;  %v39_v29 = vrot.slane %v37_v22, 2  ;;  %p174_p3 = por %p173_p2, %p172_p1 }
   0xb   :  { %v57_v30 = vrot.slane %v55_v23, 3  ;;  %v75_v31 = vrot.slane %v73_v25, 4  ;;  %vm113_vm6 = vcmask 25600   ;;  %v140_v37 = vsel %vm139_vm5, %v138_v24, 0.0 }
   0xc   :  { %v93_v32 = vrot.slane %v91_v26, 5  ;;  %v111_v33 = vrot.slane %v109_v27, 6  ;;  %v24_v34 = vsel %vm23_vm0, %v21_v28, 0.0  ;;  %v42_v35 = vsel %vm41_vm1, %v39_v29, 0.0  ;;  %p175_p4 = pnand %p174_p3, %p168_p0 }
   0xd   :  { %v60_v36 = vsel %vm59_vm2, %v57_v30, 0.0  ;;  %v25_v38 = vrot.slane %v24_v34, 4  ;;  %v43_v39 = vrot.slane %v42_v35, 4  ;;  %v78_v41 = vsel %vm77_vm3, %v75_v31, 0.0 }
   0xe   :  { %v61_v40 = vrot.slane %v60_v36, 4  ;;  %v79_v42 = vrot.slane %v78_v41, 4  ;;  %v96_v43 = vsel %vm95_vm4, %v93_v32, 0.0  ;;  %v114_v44 = vsel %vm113_vm6, %v111_v33, 0.0 }
   0xf   :  { %v26_v45 = vadd.f32 %v25_v38, %v24_v34  ;;  %v44_v46 = vadd.f32 %v43_v39, %v42_v35  ;;  %v97_v48 = vrot.slane %v96_v43, 4  ;;  %v115_v50 = vrot.slane %v114_v44, 4 }
  0x10   :  { %v62_v47 = vadd.f32 %v61_v40, %v60_v36  ;;  %v80_v49 = vadd.f32 %v79_v42, %v78_v41  ;;  %v123_v51 = vrot.slane %v210_v0, 1  ;;  %v141_v52 = vrot.slane %v140_v37, 4 }
  0x11   :  { %v27_v53 = vrot.slane %v26_v45, 2  ;;  %v45_v54 = vrot.slane %v44_v46, 2  ;;  %v98_v56 = vadd.f32 %v97_v48, %v96_v43  ;;  %v116_v58 = vadd.f32 %v115_v50, %v114_v44 }
  0x12   :  { %v63_v55 = vrot.slane %v62_v47, 2  ;;  %v81_v57 = vrot.slane %v80_v49, 2  ;;  %v142_v59 = vadd.f32 %v141_v52, %v140_v37  ;;  %v125_v3 = vsub.f32 %v210_v0, %v123_v51 }
  0x13   :  { %v28_v60 = vadd.f32 %v27_v53, %v26_v45  ;;  %v46_v61 = vadd.f32 %v45_v54, %v44_v46  ;;  %v99_v63 = vrot.slane %v98_v56, 2  ;;  %v117_v2 = vrot.slane %v116_v58, 2 }
  0x14   :  { %v64_v62 = vadd.f32 %v63_v55, %v62_v47  ;;  %v82_v1 = vadd.f32 %v81_v57, %v80_v49  ;;  %v143_v4 = vrot.slane %v142_v59, 2  ;;  %v126_v18 = vadd.f32 0.07, %v125_v3 }
  0x15   :  { %v29_v5 = vrot.slane %v28_v60, 1  ;;  %v47_v6 = vrot.slane %v46_v61, 1  ;;  %v100_v8 = vadd.f32 %v99_v63, %v98_v56  ;;  %v118_v10 = vadd.f32 %v117_v2, %v116_v58 }
  0x16   :  { %v65_v7 = vrot.slane %v64_v62, 1  ;;  %v83_v9 = vrot.slane %v82_v1, 1  ;;  %v144_v11 = vadd.f32 %v143_v4, %v142_v59  ;;  %v127_v28 = vmax.f32 %v126_v18, 0.0 }
  0x17   :  { %v30_v12 = vadd.f32 %v29_v5, %v28_v60  ;;  %v48_v13 = vadd.f32 %v47_v6, %v46_v61  ;;  %v101_v15 = vrot.slane %v100_v8, 1  ;;  %v119_v17 = vrot.slane %v118_v10, 1 }
  0x18   :  { %v66_v14 = vadd.f32 %v65_v7, %v64_v62  ;;  %v84_v16 = vadd.f32 %v83_v9, %v82_v1  ;;  %v145_v25 = vrot.slane %v144_v11, 1  ;;  %v129_v33 = vmul.f32 0.25, %v127_v28 }
  0x19   :  { %v31_v19 = vmul.f32 0.035714287, %v30_v12  ;;  %v49_v20 = vmul.f32 0.041666668, %v48_v13  ;;  %v102_v22 = vadd.f32 %v101_v15, %v100_v8  ;;  %v120_v24 = vadd.f32 %v119_v17, %v118_v10 }
  0x1a   :  { %v67_v21 = vmul.f32 0.05, %v66_v14  ;;  %v85_v23 = vmul.f32 0.0625, %v84_v16  ;;  %v146_v31 = vadd.f32 %v145_v25, %v144_v11  ;;  %vm149_vm7 = vcmask 31751  }
  0x1b   :  { %v50_v0 = vadd.f32 %v49_v20, %v31_v19  ;;  %v103_v27 = vmul.f32 0.083333336, %v102_v22  ;;  %v121_v30 = vmul.f32 0.125, %v120_v24 }
  0x1c   :  { %v147_v35 = vmul.f32 0.03125, %v146_v31 }
  0x1d   :  { %v68_v26 = vadd.f32 %v67_v21, %v50_v0 }
  0x1f   :  { %v86_v29 = vadd.f32 %v85_v23, %v68_v26 }
  0x21   :  { %v104_v32 = vadd.f32 %v103_v27, %v86_v29 }
  0x23   :  { %v122_v34 = vadd.f32 %v121_v30, %v104_v32 }
  0x25   :  { %v130_v36 = vadd.f32 %v129_v33, %v122_v34 }
  0x27   :  { %v148_v37 = vadd.f32 %v147_v35, %v130_v36 }
  0x29   :  { %150 = vst.msk [vmem:[#allocation2 - $0x7] sm:$0x80] %vm149_vm7, %v148_v37 }
  0x2a   :  { %178 = shalt.err (!%p175_p4)
}
  0x2b   :  { %s179_s17 = scalar_lea.hbm %s249_s2, 16 }
  0x2c   :  { %p180_p5 = scmp.ne.s32.totalorder %s249_s2, %s179_s17  ;;  %p183_p6 = scmp.lt.u32.totalorder %s179_s17, %s249_s2 }
  0x2e   :  { %p185_p7 = pnand %p183_p6, %p180_p5 }
  0x30   :  { %188 = shalt.err (!%p185_p7)
}
  0x31   :  { %160 = dma.vmem_to_hbm [thread:$0]  %s158_s1, 16, %s249_s2, [#allocation3]  }
  0x32   :  { %189 = dma.done.wait [#allocation3], 16  }
  0x33   :  { %190 = vsyncadd [#allocation3], 4294967280 }
  0x34   :  { %164 = vsyncpa [#allocation3], 1 }

</bundles_post_ra>
